<compile_context>
chip_gen: v6e
topology: v6e:2x2x1
jax: 0.10.0
libtpu: 0.0.40
codegen_flags: <defaults>
</compile_context>

<pallas_src>
import functools
import random

import jax
import jax.numpy as jnp
from jax.experimental import pallas as pl
from jax.experimental.pallas import tpu as pltpu


def _specmix_kernel(perm_ref, fs_ref, fe_ref, ts_ref, te_ref,   # scalar prefetch (SMEM)
                    x_ref, xp_ref,                              # inputs  (VMEM)
                    out_ref,                                    # output  (VMEM)
                    *, F, separable, plane, mod_plane,
                    max_freq_bands, max_time_bands):
    # x_ref / xp_ref / out_ref: (1, Ck, tR, L)
    tR = x_ref.shape[2]
    L = x_ref.shape[3]
    row_base = pl.program_id(1) * tR

    if separable:
        # L == F: lane dim is the freq axis -> build the mask separably as booleans.
        rows = row_base + jax.lax.broadcasted_iota(jnp.int32, (tR, 1), 0)  # frame index
        cols = jax.lax.broadcasted_iota(jnp.int32, (1, L), 1)              # freq index
        tmask = jnp.zeros((tR, 1), jnp.bool_)
        for i in range(max_time_bands):
            tmask = tmask | ((rows >= ts_ref[i]) & (rows < te_ref[i]))
        fmask = jnp.zeros((1, L), jnp.bool_)
        for i in range(max_freq_bands):
            fmask = fmask | ((cols >= fs_ref[i]) & (cols < fe_ref[i]))
        mask = tmask | fmask                                    # (tR, L) via broadcast
    else:
        # Lane-dense layout: last dim is a 128-wide flat chunk of the (T, F) plane
        # (possibly channel-flattened as well; the mask is channel-invariant).
        r_local = jax.lax.broadcasted_iota(jnp.int32, (tR, L), 0)
        l_idx = jax.lax.broadcasted_iota(jnp.int32, (tR, L), 1)
        flat = (row_base + r_local) * L + l_idx
        if mod_plane:
            flat = flat % plane          # position within one (T, F) plane
        cols = flat % F
        mask = jnp.zeros((tR, L), jnp.bool_)
        # Time bands tested directly in flat coordinates: t in [ts, te) <=> flat in [ts*F, te*F).
        # Avoids the int32 divide flat // F (no HW int div on the VPU).
        for i in range(max_time_bands):
            mask = mask | ((flat >= ts_ref[i] * F) & (flat < te_ref[i] * F))
        for i in range(max_freq_bands):
            mask = mask | ((cols >= fs_ref[i]) & (cols < fe_ref[i]))

    # Single select per element; no dtype promotion (bit-exact vs x*(1-m)+xp*m for 0/1
    # mask except when x is NaN/Inf inside a band, where `where` returns xp instead of NaN).
    out_ref[...] = jnp.where(mask[None, None, :, :], xp_ref[...], x_ref[...])


def _cdiv(a, b):
    return -(-a // b)


def _sublane_step(itemsize):
    # Minimum sublane tiles: (8,128) f32, (16,128) bf16, (32,128) int8/fp8.
    return {4: 8, 2: 16, 1: 32}.get(itemsize, 8)


def _pick_row_tile(R, C, L, itemsize, B):
    """Row tile whose 6x (2 in + 1 out, double-buffered) footprint fits ~24 MiB,
    keeps >= ~8 total grid steps (both v7x TensorCores fed) and is sublane-aligned."""
    budget_bytes = 24 * 1024 * 1024          # under the 32 MiB scoped limit on v5e/v6e/v7x
    sub = _sublane_step(itemsize)
    row_bytes = C * L * itemsize
    max_rows = max(1, budget_bytes // (6 * row_bytes))

    # Keep the grid populated for the v7x 2-TC megacore split.
    min_steps_per_batch = _cdiv(8, B)
    if min_steps_per_batch > 1:
        max_rows = min(max_rows, max(sub, _cdiv(R, min_steps_per_batch)))

    if R <= max_rows:
        return R

    tR = (max_rows // sub) * sub
    if tR == 0:
        # Degenerate: a single row of the block already exceeds the budget.
        return min(R, max(1, max_rows))

    # Prefer a nearby divisor of R (no partial last block); otherwise the non-dividing
    # tR is fine -- grid = cdiv(R, tR) and Pallas pads the final block.
    for cand in range(tR, max(sub - 1, tR - 4 * sub), -sub):
        if cand > 0 and R % cand == 0:
            return cand
    return tR


def _specmix_pallas(x, perm, freq_starts, freq_ends, time_starts, time_ends,
                    max_freq_bands, max_time_bands):
    B, C, T, F = x.shape
    orig_shape = x.shape
    plane = T * F

    # Present a 128-multiple lane dim whenever possible (unmasked full-lane stores).
    if F % 128 == 0:
        separable, mod_plane = True, False
        L, R, Ck = F, T, C
        xk = x
    elif (T * F) % 128 == 0:
        separable, mod_plane = False, False
        L, R, Ck = 128, (T * F) // 128, C
        xk = x.reshape(B, C, R, L)
    elif (C * T * F) % 128 == 0:
        separable, mod_plane = False, True
        L, R, Ck = 128, (C * T * F) // 128, 1
        xk = x.reshape(B, 1, R, L)
    else:
        # TODO(synk): pad F up to the next multiple of 128 to avoid masked partial-lane
        # stores on truly awkward shapes; currently falls back to L=F.
        separable, mod_plane = True, False
        L, R, Ck = F, T, C
        xk = x

    tR = _pick_row_tile(R, Ck, L, x.dtype.itemsize, B)
    grid = (B, pl.cdiv(R, tR))

    kernel = functools.partial(
        _specmix_kernel, F=F, separable=separable, plane=plane, mod_plane=mod_plane,
        max_freq_bands=max_freq_bands, max_time_bands=max_time_bands)

    grid_spec = pltpu.PrefetchScalarGridSpec(
        num_scalar_prefetch=5,
        grid=grid,
        in_specs=[
            # x[b]
            pl.BlockSpec((1, Ck, tR, L),
                         lambda b, j, perm, fs, fe, ts, te: (b, 0, j, 0)),
            # x[perm[b]] -- data-dependent gather via scalar prefetch
            pl.BlockSpec((1, Ck, tR, L),
                         lambda b, j, perm, fs, fe, ts, te: (perm[b], 0, j, 0)),
        ],
        out_specs=pl.BlockSpec((1, Ck, tR, L),
                               lambda b, j, perm, fs, fe, ts, te: (b, 0, j, 0)),
    )

    out = pl.pallas_call(
        kernel,
        grid_spec=grid_spec,
        out_shape=jax.ShapeDtypeStruct((B, Ck, R, L), x.dtype),
        compiler_params=pltpu.CompilerParams(
            # no shared output block / accumulator -> fully parallel grid (megacore)
            dimension_semantics=("parallel", "parallel"),
            vmem_limit_bytes=32 * 1024 * 1024),
        # TODO(synk): input_output_aliases={5: 0} when x is donatable; unsafe here
        # because the permuted read touches other batch rows of the same buffer.
    )(perm, freq_starts, freq_ends, time_starts, time_ends, xk, xk)

    return out.reshape(orig_shape)


class SpecMixPallas:
    """JAX/Pallas port of the PyTorch SpecMix module (no learned parameters)."""

    def __init__(self, prob, min_band_size, max_band_size,
                 max_frequency_bands=3, max_time_bands=3, seed=0):
        self.prob = prob
        self.min_band_size = min_band_size
        self.max_band_size = max_band_size
        self.max_frequency_bands = max_frequency_bands
        self.max_time_bands = max_time_bands
        # deterministic host-side RNG standing in for python `random`
        self._rng = random.Random(seed)
        self._key = jax.random.PRNGKey(seed)
        self.last_bands = None   # (freq_starts, freq_ends, time_starts, time_ends)

    def _sample_bands(self, axis_size, num_bands):
        starts, ends = [], []
        for _ in range(num_bands):
            band_size = self._rng.randint(self.min_band_size, self.max_band_size)
            band_size = min(band_size, axis_size)   # robustness for short clips
            mask_start = self._rng.randint(0, axis_size - band_size)
            starts.append(mask_start)
            ends.append(mask_start + band_size)
        return starts, ends

    @staticmethod
    def _pad(vals, n):
        return jnp.asarray(vals + [0] * (n - len(vals)), jnp.int32)

    def __call__(self, x):
        k = self._rng.random()
        if k > 1 - self.prob:
            B, _, frames, freq = x.shape
            self._key, sub = jax.random.split(self._key)
            perm = jax.random.permutation(sub, B).astype(jnp.int32)

            n_freq = self._rng.randint(1, self.max_frequency_bands)
            fs, fe = self._sample_bands(freq, n_freq)
            n_time = self._rng.randint(1, self.max_time_bands)
            ts, te = self._sample_bands(frames, n_time)
            self.last_bands = (fs, fe, ts, te)

            x_mixed = _specmix_pallas(
                x, perm,
                self._pad(fs, self.max_frequency_bands),
                self._pad(fe, self.max_frequency_bands),
                self._pad(ts, self.max_time_bands),
                self._pad(te, self.max_time_bands),
                self.max_frequency_bands, self.max_time_bands)

            # lambda = mean(mask) computed on the host from the band union
            # (mask[t,f] = 1 iff t in time-union OR f in freq-union).
            freq_cov, time_cov = set(), set()
            for s, e in zip(fs, fe):
                freq_cov.update(range(s, e))
            for s, e in zip(ts, te):
                time_cov.update(range(s, e))
            lam = 1.0 - ((frames - len(time_cov)) * (freq - len(freq_cov))
                         / float(frames * freq))
            lam = jnp.full((B,), lam, jnp.float32)
            return {'x_mixed': x_mixed, 'rn_indices': perm, 'mixup_lambda': lam}
        else:
            return {'x_mixed': x, 'rn_indices': None, 'mixup_lambda': None}


if __name__ == "__main__":
    # small shapes: batch=2, channels=4, frames=16, freq=16
    B, C, T, F = 2, 4, 16, 16
    x = jax.random.normal(jax.random.PRNGKey(0), (B, C, T, F), jnp.float32)

    module = SpecMixPallas(prob=1.0, min_band_size=2, max_band_size=6,
                           max_frequency_bands=3, max_time_bands=3, seed=0)
    out = module(x)
    jax.block_until_ready(out['x_mixed'])
    jax.block_until_ready(out['mixup_lambda'])

    # pure-JAX reference built from the exact bands the module sampled
    fs, fe, ts, te = module.last_bands
    perm = out['rn_indices']
    rows = jnp.arange(T)[:, None]
    cols = jnp.arange(F)[None, :]
    mask = jnp.zeros((T, F), jnp.float32)
    for s, e in zip(fs, fe):
        mask = jnp.maximum(mask, ((cols >= s) & (cols < e)).astype(jnp.float32))
    for s, e in zip(ts, te):
        mask = jnp.maximum(mask, ((rows >= s) & (rows < e)).astype(jnp.float32))
    x_ref = x * (1.0 - mask)[None, None] + x[perm] * mask[None, None]
    lam_ref = float(jnp.sum(mask)) / (T * F)

    assert jnp.allclose(out['x_mixed'], x_ref, atol=1e-6), "x_mixed mismatch"
    assert abs(float(out['mixup_lambda'][0]) - lam_ref) < 1e-6, "lambda mismatch"

    print("KERNEL_OK")
</pallas_src>

<mosaic_0001>
module attributes {stable_mosaic.version = 11 : i64} {
  func.func @_specmix_kernel(%arg0: i32, %arg1: i32, %arg2: memref<2xi32, #tpu.memory_space<smem>>, %arg3: memref<3xi32, #tpu.memory_space<smem>>, %arg4: memref<3xi32, #tpu.memory_space<smem>>, %arg5: memref<3xi32, #tpu.memory_space<smem>>, %arg6: memref<3xi32, #tpu.memory_space<smem>>, %arg7: memref<1x4x2x128xf32, #tpu.memory_space<vmem>>, %arg8: memref<1x4x2x128xf32, #tpu.memory_space<vmem>>, %arg9: memref<1x4x2x128xf32, #tpu.memory_space<vmem>>) attributes {dimension_semantics = [#tpu.dimension_semantics<parallel>, #tpu.dimension_semantics<parallel>], iteration_bounds = array<i64: 2, 1>, scalar_prefetch = 5 : i64, scratch_operands = 0 : i64, tpu.core_type = #tpu.core_type<tc>, window_params = [{transform_indices = @transform_0, window_bounds = array<i64: 1, 4, 2, 128>}, {transform_indices = @transform_1, window_bounds = array<i64: 1, 4, 2, 128>}, {transform_indices = @transform_2, window_bounds = array<i64: 1, 4, 2, 128>}]} {
    %c2_i32 = arith.constant 2 : i32
    %0 = arith.muli %arg1, %c2_i32 : i32
    %1 = tpu.iota {dimensions = array<i32: 0>} : vector<2x128xi32>
    %2 = tpu.iota {dimensions = array<i32: 1>} : vector<2x128xi32>
    %3 = vector.broadcast %0 : i32 to vector<2x128xi32>
    %4 = arith.addi %3, %1 : vector<2x128xi32>
    %c128_i32 = arith.constant 128 : i32
    %5 = vector.broadcast %c128_i32 : i32 to vector<2x128xi32>
    %6 = arith.muli %4, %5 : vector<2x128xi32>
    %7 = arith.addi %6, %2 : vector<2x128xi32>
    %c16_i32 = arith.constant 16 : i32
    %c0_i32 = arith.constant 0 : i32
    %8 = arith.cmpi eq, %c16_i32, %c0_i32 : i32
    %c1_i32 = arith.constant 1 : i32
    %9 = arith.select %8, %c1_i32, %c16_i32 : i32
    %10 = vector.broadcast %9 : i32 to vector<2x128xi32>
    %11 = arith.remsi %7, %10 : vector<2x128xi32>
    %c0_i32_0 = arith.constant 0 : i32
    %12 = vector.broadcast %c0_i32_0 : i32 to vector<2x128xi32>
    %13 = arith.cmpi ne, %11, %12 : vector<2x128xi32>
    %c0_i32_1 = arith.constant 0 : i32
    %14 = vector.broadcast %c0_i32_1 : i32 to vector<2x128xi32>
    %15 = arith.cmpi slt, %11, %14 : vector<2x128xi32>
    %c0_i32_2 = arith.constant 0 : i32
    %16 = arith.cmpi slt, %9, %c0_i32_2 : i32
    %17 = vector.broadcast %16 : i1 to vector<2x128xi1>
    %18 = vector.broadcast %17 : vector<2x128xi1> to vector<2x128xi1>
    %19 = arith.xori %15, %18 : vector<2x128xi1>
    %20 = arith.andi %19, %13 : vector<2x128xi1>
    %21 = vector.broadcast %9 : i32 to vector<2x128xi32>
    %22 = arith.addi %11, %21 : vector<2x128xi32>
    %23 = arith.select %20, %22, %11 : vector<2x128xi1>, vector<2x128xi32>
    %false = arith.constant false
    %24 = vector.broadcast %false : i1 to vector<2x128xi1>
    %c0 = arith.constant 0 : index
    %25 = memref.load %arg5[%c0] : memref<3xi32, #tpu.memory_space<smem>>
    %c16_i32_3 = arith.constant 16 : i32
    %26 = arith.muli %25, %c16_i32_3 : i32
    %27 = vector.broadcast %26 : i32 to vector<2x128xi32>
    %28 = arith.cmpi sge, %7, %27 : vector<2x128xi32>
    %c0_4 = arith.constant 0 : index
    %29 = memref.load %arg6[%c0_4] : memref<3xi32, #tpu.memory_space<smem>>
    %c16_i32_5 = arith.constant 16 : i32
    %30 = arith.muli %29, %c16_i32_5 : i32
    %31 = vector.broadcast %30 : i32 to vector<2x128xi32>
    %32 = arith.cmpi slt, %7, %31 : vector<2x128xi32>
    %33 = arith.andi %28, %32 : vector<2x128xi1>
    %34 = arith.ori %24, %33 : vector<2x128xi1>
    %c1 = arith.constant 1 : index
    %35 = memref.load %arg5[%c1] : memref<3xi32, #tpu.memory_space<smem>>
    %c16_i32_6 = arith.constant 16 : i32
    %36 = arith.muli %35, %c16_i32_6 : i32
    %37 = vector.broadcast %36 : i32 to vector<2x128xi32>
    %38 = arith.cmpi sge, %7, %37 : vector<2x128xi32>
    %c1_7 = arith.constant 1 : index
    %39 = memref.load %arg6[%c1_7] : memref<3xi32, #tpu.memory_space<smem>>
    %c16_i32_8 = arith.constant 16 : i32
    %40 = arith.muli %39, %c16_i32_8 : i32
    %41 = vector.broadcast %40 : i32 to vector<2x128xi32>
    %42 = arith.cmpi slt, %7, %41 : vector<2x128xi32>
    %43 = arith.andi %38, %42 : vector<2x128xi1>
    %44 = arith.ori %34, %43 : vector<2x128xi1>
    %c2 = arith.constant 2 : index
    %45 = memref.load %arg5[%c2] : memref<3xi32, #tpu.memory_space<smem>>
    %c16_i32_9 = arith.constant 16 : i32
    %46 = arith.muli %45, %c16_i32_9 : i32
    %47 = vector.broadcast %46 : i32 to vector<2x128xi32>
    %48 = arith.cmpi sge, %7, %47 : vector<2x128xi32>
    %c2_10 = arith.constant 2 : index
    %49 = memref.load %arg6[%c2_10] : memref<3xi32, #tpu.memory_space<smem>>
    %c16_i32_11 = arith.constant 16 : i32
    %50 = arith.muli %49, %c16_i32_11 : i32
    %51 = vector.broadcast %50 : i32 to vector<2x128xi32>
    %52 = arith.cmpi slt, %7, %51 : vector<2x128xi32>
    %53 = arith.andi %48, %52 : vector<2x128xi1>
    %54 = arith.ori %44, %53 : vector<2x128xi1>
    %c0_12 = arith.constant 0 : index
    %55 = memref.load %arg3[%c0_12] : memref<3xi32, #tpu.memory_space<smem>>
    %56 = vector.broadcast %55 : i32 to vector<2x128xi32>
    %57 = arith.cmpi sge, %23, %56 : vector<2x128xi32>
    %c0_13 = arith.constant 0 : index
    %58 = memref.load %arg4[%c0_13] : memref<3xi32, #tpu.memory_space<smem>>
    %59 = vector.broadcast %58 : i32 to vector<2x128xi32>
    %60 = arith.cmpi slt, %23, %59 : vector<2x128xi32>
    %61 = arith.andi %57, %60 : vector<2x128xi1>
    %62 = arith.ori %54, %61 : vector<2x128xi1>
    %c1_14 = arith.constant 1 : index
    %63 = memref.load %arg3[%c1_14] : memref<3xi32, #tpu.memory_space<smem>>
    %64 = vector.broadcast %63 : i32 to vector<2x128xi32>
    %65 = arith.cmpi sge, %23, %64 : vector<2x128xi32>
    %c1_15 = arith.constant 1 : index
    %66 = memref.load %arg4[%c1_15] : memref<3xi32, #tpu.memory_space<smem>>
    %67 = vector.broadcast %66 : i32 to vector<2x128xi32>
    %68 = arith.cmpi slt, %23, %67 : vector<2x128xi32>
    %69 = arith.andi %65, %68 : vector<2x128xi1>
    %70 = arith.ori %62, %69 : vector<2x128xi1>
    %c2_16 = arith.constant 2 : index
    %71 = memref.load %arg3[%c2_16] : memref<3xi32, #tpu.memory_space<smem>>
    %72 = vector.broadcast %71 : i32 to vector<2x128xi32>
    %73 = arith.cmpi sge, %23, %72 : vector<2x128xi32>
    %c2_17 = arith.constant 2 : index
    %74 = memref.load %arg4[%c2_17] : memref<3xi32, #tpu.memory_space<smem>>
    %75 = vector.broadcast %74 : i32 to vector<2x128xi32>
    %76 = arith.cmpi slt, %23, %75 : vector<2x128xi32>
    %77 = arith.andi %73, %76 : vector<2x128xi1>
    %78 = arith.ori %70, %77 : vector<2x128xi1>
    %79 = vector.shape_cast %78 : vector<2x128xi1> to vector<1x1x2x128xi1>
    %c0_18 = arith.constant 0 : index
    %c0_19 = arith.constant 0 : index
    %c0_20 = arith.constant 0 : index
    %c0_21 = arith.constant 0 : index
    %80 = vector.load %arg8[%c0_18, %c0_19, %c0_20, %c0_21] : memref<1x4x2x128xf32, #tpu.memory_space<vmem>>, vector<1x4x2x128xf32>
    %c0_22 = arith.constant 0 : index
    %c0_23 = arith.constant 0 : index
    %c0_24 = arith.constant 0 : index
    %c0_25 = arith.constant 0 : index
    %81 = vector.load %arg7[%c0_22, %c0_23, %c0_24, %c0_25] : memref<1x4x2x128xf32, #tpu.memory_space<vmem>>, vector<1x4x2x128xf32>
    %82 = vector.shape_cast %79 : vector<1x1x2x128xi1> to vector<1x1x2x128xi1>
    %83 = vector.broadcast %82 : vector<1x1x2x128xi1> to vector<1x4x2x128xi1>
    %84 = arith.select %83, %80, %81 : vector<1x4x2x128xi1>, vector<1x4x2x128xf32>
    %c0_26 = arith.constant 0 : index
    %c0_27 = arith.constant 0 : index
    %c0_28 = arith.constant 0 : index
    %c0_29 = arith.constant 0 : index
    %85 = vector.load %arg9[%c0_26, %c0_27, %c0_28, %c0_29] : memref<1x4x2x128xf32, #tpu.memory_space<vmem>>, vector<1x4x2x128xf32>
    tpu.vector_store %arg9[%c0_26, %c0_27, %c0_28, %c0_29], %84 {strides = array<i32>} : memref<1x4x2x128xf32, #tpu.memory_space<vmem>>, vector<1x4x2x128xf32>,
    return
  }
  func.func @transform_0(%arg0: i32, %arg1: i32, %arg2: memref<2xi32, #tpu.memory_space<smem>>, %arg3: memref<3xi32, #tpu.memory_space<smem>>, %arg4: memref<3xi32, #tpu.memory_space<smem>>, %arg5: memref<3xi32, #tpu.memory_space<smem>>, %arg6: memref<3xi32, #tpu.memory_space<smem>>) -> (i32, i32, i32, i32) {
    %c0_i32 = arith.constant 0 : i32
    %c0_i32_0 = arith.constant 0 : i32
    %c0_i32_1 = arith.constant 0 : i32
    return %arg0, %c0_i32, %arg1, %c0_i32_0 : i32, i32, i32, i32
  }
  func.func @transform_1(%arg0: i32, %arg1: i32, %arg2: memref<2xi32, #tpu.memory_space<smem>>, %arg3: memref<3xi32, #tpu.memory_space<smem>>, %arg4: memref<3xi32, #tpu.memory_space<smem>>, %arg5: memref<3xi32, #tpu.memory_space<smem>>, %arg6: memref<3xi32, #tpu.memory_space<smem>>) -> (i32, i32, i32, i32) {
    %0 = arith.index_cast %arg0 : i32 to index
    %1 = memref.load %arg2[%0] : memref<2xi32, #tpu.memory_space<smem>>
    %c0_i32 = arith.constant 0 : i32
    %c0_i32_0 = arith.constant 0 : i32
    %c0_i32_1 = arith.constant 0 : i32
    return %1, %c0_i32, %arg1, %c0_i32_0 : i32, i32, i32, i32
  }
  func.func @transform_2(%arg0: i32, %arg1: i32, %arg2: memref<2xi32, #tpu.memory_space<smem>>, %arg3: memref<3xi32, #tpu.memory_space<smem>>, %arg4: memref<3xi32, #tpu.memory_space<smem>>, %arg5: memref<3xi32, #tpu.memory_space<smem>>, %arg6: memref<3xi32, #tpu.memory_space<smem>>) -> (i32, i32, i32, i32) {
    %c0_i32 = arith.constant 0 : i32
    %c0_i32_0 = arith.constant 0 : i32
    %c0_i32_1 = arith.constant 0 : i32
    return %arg0, %c0_i32, %arg1, %c0_i32_0 : i32, i32, i32, i32
  }
}

</mosaic_0001>

<bundles_post_ra>
// kernel: tpu_custom_call.1
= control target key start
LH: loop header
LB: loop body
LE: loop exit
PB: predicated region body
PF: predicated region fallthrough
CT: control target
= control target key end

     0   :  { %s834_s24 = smov [#allocation3]   ;;  %s1227_s0 = inlined_call_operand.hbm [shape: s32[2], index: 0, kind: input, shape index: {}]   ;;  %s1228_s5 = inlined_call_operand.hbm [shape: f32[2,4,2,128], index: 5, kind: input, shape index: {}]   ;;  %s1229_s6 = inlined_call_operand.hbm [shape: f32[2,4,2,128], index: 6, kind: input, shape index: {}]   ;;  %s1230_s7 = inlined_call_operand.hbm [shape: f32[2,4,2,128], index: 7, kind: output, shape index: {}]   ;;  %s1231_s1 = inlined_call_operand.vmem [shape: s32[3], index: 1, kind: input, shape index: {}]   ;;  %s1232_s2 = inlined_call_operand.vmem [shape: s32[3], index: 2, kind: input, shape index: {}]   ;;  %s1233_s3 = inlined_call_operand.vmem [shape: s32[3], index: 3, kind: input, shape index: {}]   ;;  %s1234_s4 = inlined_call_operand.vmem [shape: s32[3], index: 4, kind: input, shape index: {}]  }
   0x1   :  { %1243 = sst [smem:[#allocation21_spill]] %s1228_s5  ;;  %s14_s29 = sshll.u32 %s1231_s1, 4  ;;  %s15_s29 = int_to_ptr.vmem [resolvable:$true] %s14_s29 }
   0x2   :  { %1244 = sst [smem:[#allocation22_spill]] %s1229_s6  ;;  %s18_s9 = sshll.u32 %s1232_s2, 4  ;;  %s19_s9 = int_to_ptr.vmem [resolvable:$true] %s18_s9 }
   0x3   :  { %13 = dma.hbm_to_smem %s1227_s0, 16, %s834_s24, [#allocation2] }
   0x4   :  { %s618_s10 = scalar_lea.vmem %s15_s29, 16  ;;  %p623_p1 = scmp.lt.s32.totalorder %s15_s29, %s15_s29 }
   0x5   :  { %p619_p0 = scmp.ne.s32.totalorder %s15_s29, %s618_s10  ;;  %p624_p2 = scmp.lt.s32.totalorder %s618_s10, %s618_s10 }
   0x7   :  { %p625_p3 = por %p624_p2, %p623_p1 }
   0x9   :  { %p626_p4 = pnand %p625_p3, %p619_p0 }
   0xb   :  { %629 = shalt.err (!%p626_p4)  }
   0xc   :  { %s835_s11 = smov [#allocation4]   ;;  %s22_s13 = sshll.u32 %s1233_s3, 4  ;;  %s23_s13 = int_to_ptr.vmem [resolvable:$true] %s22_s13 }
   0xd   :  { %17 = dma.vmem_to_smem %s15_s29, 16, %s835_s11, [#allocation2] }
   0xe   :  { %s630_s1 = scalar_lea.vmem %s19_s9, 16  ;;  %p635_p6 = scmp.lt.s32.totalorder %s19_s9, %s19_s9 }
   0xf   :  { %p631_p5 = scmp.ne.s32.totalorder %s19_s9, %s630_s1  ;;  %p636_p7 = scmp.lt.s32.totalorder %s630_s1, %s630_s1 }
  0x11   :  { %p637_p8 = por %p636_p7, %p635_p6 }
  0x13   :  { %p638_p9 = pnand %p637_p8, %p631_p5 }
  0x15   :  { %641 = shalt.err (!%p638_p9)  }
  0x16   :  { %s836_s2 = smov [#allocation5]   ;;  %s642_s14 = scalar_lea.vmem %s23_s13, 16 }
  0x17   :  { %21 = dma.vmem_to_smem %s19_s9, 16, %s836_s2, [#allocation2] }
  0x18   :  { %p643_p10 = scmp.ne.s32.totalorder %s23_s13, %s642_s14  ;;  %p647_p11 = scmp.lt.s32.totalorder %s23_s13, %s23_s13 }
  0x19   :  { %p648_p12 = scmp.lt.s32.totalorder %s642_s14, %s642_s14 }
  0x1b   :  { %p649_p13 = por %p648_p12, %p647_p11 }
  0x1d   :  { %p650_p0 = pnand %p649_p13, %p643_p10 }
  0x1f   :  { %653 = shalt.err (!%p650_p0)  }
  0x20   :  { %s837_s15 = smov [#allocation6]   ;;  %s26_s17 = sshll.u32 %s1234_s4, 4  ;;  %s27_s17 = int_to_ptr.vmem [resolvable:$true] %s26_s17 }
  0x21   :  { %25 = dma.vmem_to_smem %s23_s13, 16, %s837_s15, [#allocation2] }
  0x22   :  { %s654_s18 = scalar_lea.vmem %s27_s17, 16  ;;  %p659_p2 = scmp.lt.s32.totalorder %s27_s17, %s27_s17 }
  0x23   :  { %p655_p1 = scmp.ne.s32.totalorder %s27_s17, %s654_s18  ;;  %p660_p3 = scmp.lt.s32.totalorder %s654_s18, %s654_s18 }
  0x25   :  { %p661_p4 = por %p660_p3, %p659_p2 }
  0x27   :  { %p662_p5 = pnand %p661_p4, %p655_p1 }
  0x29   :  { %665 = shalt.err (!%p662_p5)  }
  0x2a   :  { %s838_s19 = smov [#allocation7]  }
  0x2b   :  { %29 = dma.vmem_to_smem %s27_s17, 16, %s838_s19, [#allocation2] }
  0x2c   :  { %784 = dma.done.wait [#allocation2], 80 }
  0x2d   :  { %785 = vsyncadd [#allocation2], 4294967216 }
  0x2e   :  { %31 = sfence }
  0x2f   :  { %32 = vsyncpa [#allocation9], 0 }
  0x30   :  { %34 = vsyncpa [#allocation9 + $0x1], 0 }
  0x31   :  { %35 = vsyncpa [#allocation12], 0 }
  0x32   :  { %37 = vsyncpa [#allocation12 + $0x1], 0 }
  0x33   :  { %38 = vsyncpa [#allocation10], 0 }
  0x34   :  { %40 = vsyncpa [#allocation10 + $0x1], 0  ;;  %s902_s4 = smov 0   ;;  %s904_s20 = smov 0  }
  0x35   :  { %s906_s21 = smov 0   ;;  %s908_s22 = smov 0  }
  0x36   :  { %s910_s23 = smov 0   ;;  %s912_s24 = smov 0  }
  0x37   :  { %s914_s25 = smov 0   ;;  %s916_s26 = smov 0  }
  0x38   :  { %s918_s27 = smov 0  }
  0x39 LB: > { %s468_s28 = sadd.s32 4294967295, %s832_s27   ;;  %s469_s29 = sadd.s32 4294967294, %s832_s27   ;;  %s832_s27 = sphi %s918_s27, %s46_s27   ;;  %s828_s26 = sphi %s916_s26, %s1281_s26   ;;  %s824_s25 = sphi %s914_s25, %s1280_s25   ;;  %s820_s24 = sphi %s912_s24, %s1279_s24   ;;  %s816_s23 = sphi %s910_s23, %s1278_s23   ;;  %s812_s22 = sphi %s908_s22, %s1277_s22   ;;  %s808_s21 = sphi %s906_s21, %s1276_s21   ;;  %s804_s20 = sphi %s904_s20, %s1275_s20   ;;  %s800_s4 = sphi %s902_s4, %s1274_s4  }
  0x3a   : > { %s58_s30 = sadd.s32 1, %s828_s26  ;;  %s67_s8 = sadd.s32 1, %s820_s24 }
  0x3b   : > { %p60_p6 = scmp.ge.s32.totalorder %s58_s30, 2  ;;  %p74_p7 = scmp.ne.s32.totalorder %s820_s24, %s816_s23 }
  0x3c   : > { %p1236_p8 = scmp.eq.s32.totalorder %s832_s27, 0  ;;  %p80_p9 = scmp.ne.s32.totalorder %s816_s23, %s812_s22 }
  0x3d   : > { %s1283_s30 = smov (%p60_p6, %s58_s30), 0  ;;  %p967_p11 = scmp.eq.s32.totalorder %s468_s28, 0 }
  0x3e   : > { %1245 = sst [smem:[#allocation20_spill]] %s1283_s30  ;;  %p963_p10 = por %p1236_p8, %p74_p7 }
  0x3f   : > { %s62_s11 = ssub.s32 %s828_s26, %s1283_s30  ;;  %s974_s0 = sld [smem:[#allocation3 + %s828_s26]] }
  0x40   : > { %p65_p12 = scmp.eq.s32.totalorder %s62_s11, 0  ;;  %p981_p13 = por %p967_p11, %p80_p9 }
  0x41   : > { %s986_s13 = sld [smem:[#allocation3 + %s1283_s30]]  ;;  %p136_p0 = scmp.eq.s32.totalorder %s468_s28, 1 }
  0x42   : > { %s1248_s12 = scalar_select %p981_p13, 1, 0 }
  0x43   : > { %s989_s1 = scalar_select %p65_p12, %s820_s24, %s67_s8  }
  0x44   : > { %p994_p1 = por %p136_p0, %p74_p7  ;;  %p142_p2 = scmp.eq.s32.totalorder %s469_s29, 1 }
  0x45   : > { %p526_p4 = scmp.lt.s32.totalorder %s832_s27, 2  ;;  %s162_s15 = sand.u32 1, %s820_s24  }
  0x46   : > { %s1249_s2 = scalar_select %p994_p1, 1, 0 }
  0x47   : > { %p1003_p5 = por %p142_p2, %p80_p9  ;;  %s472_s3 = sshll.u32 %s162_s15, 3 }
  0x48   : > { %s502_s16 = sshll.u32 %s828_s26, 7  ;;  %s1251_s5 = sld [smem:[#allocation21_spill]] }
  0x49   : > { %s1250_s14 = scalar_select %p1003_p5, 1, 0 }
  0x4a   : > { %s166_s28 = scalar_lea.vmem [#allocation8], %s472_s3  ;;  %p1016_p6 = pnand %p526_p4, %p963_p10 }
  0x4b   : > { %s174_s8 = sshll.u32 %s166_s28, 4  ;;  %p478_p7 = scmp.ge.s32.totalorder %s832_s27, 1  ;;  %s175_s8 = int_to_ptr.vmem [resolvable:$true] %s174_s8 }
  0x4c   : > { %s163_s11 = scalar_lea.sflag [#allocation9], %s162_s15  ;;  %p668_p9 = pneg %p1016_p6 }
  0x4d   : > { %s679_s30 = scalar_lea.vmem %s175_s8, 128  ;;  %s839_s17 = smov [#allocation8]  }
  0x4e   : > { %s173_s19 = scalar_lea.hbm %s1251_s5, %s502_s16  ;;  %p680_p12 = scmp.ne.s32.totalorder %s175_s8, %s679_s30 }
  0x4f   : > { %s684_s16 = sshll.u32 %s839_s17, 4  ;;  %s685_s16 = int_to_ptr.vmem [resolvable:$false] %s684_s16 }
  0x50   : > { %p682_p0 = pnand %p680_p12, %p668_p9  ;;  %s686_s3 = scalar_lea.vmem %s685_s16, 256 }
  0x51   : > { %p687_p3 = scmp.lt.s32.totalorder %s175_s8, %s685_s16  ;;  %p688_p8 = scmp.lt.s32.totalorder %s686_s3, %s679_s30 }
  0x52   : > { %p683_p2 = pneg %p682_p0 }
  0x53   : > { %p689_p5 = por %p688_p8, %p687_p3 }
  0x55   : > { %p690_p10 = pnand %p689_p5, %p683_p2 }
  0x57   : > { %693 = shalt.err (!%p690_p10)
}
  0x58   : > { %s1237_s9 = smov 32   ;;  %s1238_s30 = smov 2  }
  0x59   : > { %516 = dma.hbm_to_vmem [thread:$0]  (!%p1016_p6), %s173_s19, 128, %s175_s8, %s163_s11, %s1237_s9, %s1237_s9, %s1238_s30  }
  0x5a   : > { %p205_p8 = scmp.lt.s32.totalorder %s832_s27, 3  ;;  %s92_s18 = ssub.s32 %s974_s0, %s986_s13 }
  0x5b   : > { %s97_s28 = sadd.s32 1, %s808_s21  ;;  %p95_p5 = scmp.eq.s32.totalorder %s92_s18, 0 }
  0x5c   : > { %p1031_p3 = pnand %p478_p7, %p205_p8  ;;  %p104_p9 = scmp.ne.s32.totalorder %s808_s21, %s804_s20 }
  0x5d   : > { %p110_p12 = scmp.ne.s32.totalorder %s804_s20, %s800_s4  ;;  %s184_s17 = sand.u32 1, %s808_s21  }
  0x5e   : > { %s1253_s15 = scalar_select %p1031_p3, 1, 0 }
  0x5f   : > { %s1044_s29 = scalar_select %p95_p5, %s808_s21, %s97_s28  }
  0x60   : > { %p1254_p0 = scmp.eq.s32.totalorder %s832_s27, 0  ;;  %p1050_p6 = por %p110_p12, %p967_p11 }
  0x61   : > { %s475_s8 = sshll.u32 %s184_s17, 3  ;;  %s1257_s6 = sld [smem:[#allocation22_spill]] }
  0x62   : > { %p106_p2 = por %p104_p9, %p1254_p0  ;;  %s188_s16 = scalar_lea.vmem [#allocation11], %s475_s8 }
  0x63   : > { %s1255_s19 = scalar_select %p1050_p6, 1, 0 }
  0x64   : > { %p1056_p7 = pnand %p526_p4, %p106_p2  ;;  %s197_s10 = sshll.u32 %s188_s16, 4  ;;  %s1065_s10 = int_to_ptr.vmem [resolvable:$true] %s197_s10 }
  0x65   : > { %s506_s0 = scalar_select %p106_p2, [#allocation3], [#allocation14] }
  0x66   : > { %s507_s13 = scalar_select %p106_p2, %s828_s26, 0 }
  0x67   : > { %s1285_s0 = smov (!%p526_p4, %s506_s0), [#allocation15]  ;;  %s1072_s30 = scalar_lea.sflag [#allocation12], %s184_s17 }
  0x68   : > { %s1287_s13 = smov (!%p526_p4, %s507_s13), 0  ;;  %p696_p4 = pneg %p1056_p7 }
  0x69   : > { %s189_s4 = sld [smem:[%s1285_s0 + %s1287_s13]]  ;;  %s699_s13 = scalar_lea.hbm %s1257_s6, 256 }
  0x6f   : > { %s503_s3 = sshll.u32 %s189_s4, 7 }
  0x70   : > { %s1070_s9 = scalar_lea.hbm %s1257_s6, %s503_s3 }
  0x71   : > { %s694_s5 = scalar_lea.hbm %s1070_s9, 128  ;;  %p700_p5 = scmp.lt.s32.totalorder %s1070_s9, %s1257_s6 }
  0x72   : > { %p695_p11 = scmp.ne.s32.totalorder %s1070_s9, %s694_s5  ;;  %p701_p9 = scmp.lt.s32.totalorder %s699_s13, %s694_s5 }
  0x74   : > { %p697_p10 = pnand %p696_p4, %p695_p11  ;;  %p702_p12 = por %p701_p9, %p700_p5 }
  0x76   : > { %p698_p8 = pneg %p697_p10 }
  0x78   : > { %p703_p0 = pnand %p702_p12, %p698_p8 }
  0x7a   : > { %706 = shalt.err (!%p703_p0)
}
  0x7b   : > { %s707_s17 = scalar_lea.vmem %s1065_s10, 128  ;;  %s842_s3 = smov [#allocation11]  }
  0x7c   : > { %p708_p2 = scmp.ne.s32.totalorder %s1065_s10, %s707_s17  ;;  %s712_s18 = sshll.u32 %s842_s3, 4  ;;  %s713_s18 = int_to_ptr.vmem [resolvable:$false] %s712_s18 }
  0x7d   : > { %s714_s28 = scalar_lea.vmem %s713_s18, 256  ;;  %p715_p10 = scmp.lt.s32.totalorder %s1065_s10, %s713_s18 }
  0x7e   : > { %p710_p1 = pnand %p708_p2, %p696_p4  ;;  %p716_p6 = scmp.lt.s32.totalorder %s714_s28, %s707_s17 }
  0x80   : > { %p711_p11 = pneg %p710_p1  ;;  %p717_p13 = por %p716_p6, %p715_p10 }
  0x82   : > { %p718_p3 = pnand %p717_p13, %p711_p11 }
  0x84   : > { %721 = shalt.err (!%p718_p3)
}
  0x85   : > { %s1258_s5 = smov 2   ;;  %s1259_s8 = smov 32  }
  0x86   : > { %521 = dma.hbm_to_vmem [thread:$0]  (!%p1056_p7), %s1070_s9, 128, %s1065_s10, %s1072_s30, %s1259_s8, %s1259_s8, %s1258_s5  }
  0x87   : > { %p1260_p1 = scmp.ne.s32.totalorder %s1253_s15, 0 }
  0x88   : > { %s1099_s0 = sand.u32 (!%p1260_p1), 1, %s816_s23   ;;  %p1261_p13 = scmp.ne.s32.totalorder (!%p1260_p1), %s1248_s12, 0 }
  0x89   : > { %209 = sbr.rel (%p1260_p1) target bundleno = 192 (0xc0), region = 28  ;;  %s1242_s13 = sshll.u32 (!%p1260_p1), %s1099_s0, 3 }
  0x8a   : > { %s212_s4 = scalar_lea.sflag (!%p1260_p1), [#allocation9], %s1099_s0  ;;  %s1105_s11 = scalar_lea.vmem (!%p1260_p1), [#allocation8], %s1242_s13 }
  0x8e   : > { %787 = dma.done.wait (%p1261_p13), %s212_s4, 128  }
  0x8f   : > { %789 = vsyncadd (%p1261_p13), %s212_s4, 4294967168  ;;  %s220_s9 = sand.u32 1, %s804_s20   ;;  %p1262_p3 = scmp.ne.s32.totalorder %s1255_s19, 0 }
  0x90   : > { %s480_s30 = sshll.u32 %s220_s9, 3  ;;  %s221_s15 = scalar_lea.sflag [#allocation12], %s220_s9 }
  0x91   : > { %s1112_s10 = scalar_lea.vmem [#allocation11], %s480_s30 }
  0x92   : > { %791 = dma.done.wait (%p1262_p3), %s221_s15, 128  }
  0x93   : > { %793 = vsyncadd (%p1262_p3), %s221_s15, 4294967168  ;;  %v252_v0 = vlaneseq  ;;  %s272_s16 = sld [smem:[#allocation6]]  ;;  %v325_v27 = vld [vmem:[%s1112_s10] sm:$0x3]  ;;  %v329_v28 = vld [vmem:[%s1105_s11] sm:$0x3] }
  0x94   : > { %s276_s17 = sld [smem:[#allocation7]]  ;;  %v326_v29 = vld [vmem:[%s1112_s10 + $0x2] sm:$0x3]  ;;  %v330_v30 = vld [vmem:[%s1105_s11 + $0x2] sm:$0x3]  ;;  %v843_v35 = vmov 0  }
  0x95   : > { %v253_v1 = vshrl.u32 %v252_v0, 7  ;;  %v255_v2 = vand.u32 127, %v252_v0  ;;  %s485_s3 = sld [smem:[#allocation6 + $0x1]]  ;;  %v327_v31 = vld [vmem:[%s1112_s10 + $0x4] sm:$0x3]  ;;  %p1270_p7 = scmp.ne.s32.totalorder %s1249_s2, 0 }
  0x96   : > { %s487_s12 = sld [smem:[#allocation7 + $0x1]]  ;;  %v331_v32 = vld [vmem:[%s1105_s11 + $0x4] sm:$0x3]  ;;  %v328_v33 = vld [vmem:[%s1112_s10 + $0x6] sm:$0x3] }
  0x97   : > { %v258_v3 = vmul.u32 128, %v253_v1  ;;  %s489_s18 = sld [smem:[#allocation6 + $0x2]]  ;;  %v332_v34 = vld [vmem:[%s1105_s11 + $0x6] sm:$0x3]  ;;  %s344_s11 = scalar_lea.sflag [#allocation10], %s1099_s0 }
  0x98   : > { %s1118_s28 = sld [smem:[#allocation7 + $0x2]] }
  0x99   : > { %v259_v4 = vadd.s32 %v258_v3, %v255_v2  ;;  %s483_s5 = sshll.u32 %s272_s16, 4  ;;  %s1120_s8 = sld [smem:[#allocation4]] }
  0x9a   : > { %v274_v6 = vstv %s483_s5  ;;  %s484_s4 = sshll.u32 %s276_s17, 4  ;;  %s1122_s19 = sld [smem:[#allocation5]] }
  0x9b   : > { %v261_v5 = vsub.s32 0, %v259_v4  ;;  %vm275_vm0 = vcmp.ge.s32.totalorder %v259_v4, %v274_v6  ;;  %v278_v7 = vstv %s484_s4  ;;  %s486_s9 = sshll.u32 %s485_s3, 4  ;;  %s1124_s30 = sld [smem:[#allocation4 + $0x1]]  ;;  %vm260_vm5 = vcmp.lt.s32.totalorder %v259_v4, 0 }
  0x9c   : > { %vm279_vm1 = vcmp.lt.s32.totalorder %v259_v4, %v278_v7  ;;  %v283_v9 = vstv %s486_s9  ;;  %s488_s15 = sshll.u32 %s487_s12, 4  ;;  %s1126_s13 = sld [smem:[#allocation5 + $0x1]] }
  0x9d   : > { %v482_v8 = vmin.u32 %v261_v5, %v259_v4  ;;  %vm284_vm2 = vcmp.ge.s32.totalorder %v259_v4, %v283_v9  ;;  %v287_v10 = vstv %s488_s15  ;;  %s490_s16 = sshll.u32 %s489_s18, 4  ;;  %s1128_s6 = sld [smem:[#allocation4 + $0x2]]  ;;  %vm1130_vm3 = vmand %vm275_vm0, %vm279_vm1 }
  0x9e   : > { %vm288_vm4 = vcmp.lt.s32.totalorder %v259_v4, %v287_v10  ;;  %v293_v13 = vstv %s490_s16  ;;  %s492_s17 = sshll.u32 %s1118_s28, 4  ;;  %s496_s3 = sld [smem:[#allocation5 + $0x2]] }
  0x9f   : > { %v264_v11 = vand.u32 15, %v482_v8  ;;  %vm1135_vm6 = vmand %vm284_vm2, %vm288_vm4  ;;  %vm294_vm7 = vcmp.ge.s32.totalorder %v259_v4, %v293_v13  ;;  %v297_v15 = vstv %s492_s17  ;;  %v302_v18 = vstv %s1120_s8  ;;  %s504_s18 = sshll.u32 %s824_s25, 7  ;;  %s844_s8 = smov [#allocation13]  }
  0xa0   : > { %vm298_vm8 = vcmp.lt.s32.totalorder %v259_v4, %v297_v15  ;;  %vm290_vm9 = vmor %vm1130_vm3, %vm1135_vm6  ;;  %v305_v19 = vstv %s1122_s19  ;;  %s1170_s25 = scalar_lea.hbm %s1230_s7, %s504_s18  ;;  %s726_s4 = sshll.u32 %s844_s8, 4  ;;  %s727_s4 = int_to_ptr.vmem [resolvable:$false] %s726_s4 }
  0xa1   : > { %v265_v16 = vsub.s32 0, %v264_v11  ;;  %vm299_vm10 = vmand %vm294_vm7, %vm298_vm8  ;;  %v310_v20 = vstv %s1124_s30  ;;  %s728_s19 = scalar_lea.vmem %s727_s4, 256 }
  0xa2   : > { %v313_v22 = vstv %s1126_s13  ;;  %vm300_vm14 = vmor %vm290_vm9, %vm299_vm10 }
  0xa3   : > { %v266_v17 = vsel %vm260_vm5, %v265_v16, %v264_v11  ;;  %v318_v24 = vstv %s1128_s6  ;;  %s1269_s6 = sshll.u32 %s1099_s0, 3 }
  0xa4   : > { %vm267_vm11 = vcmp.ne.s32.totalorder %v266_v17, 0  ;;  %vm268_vm12 = vcmp.lt.s32.totalorder %v266_v17, 0  ;;  %v270_v21 = vadd.s32 16, %v266_v17  ;;  %v321_v25 = vstv %s496_s3  ;;  %s249_s13 = scalar_lea.vmem [#allocation13], %s1269_s6 }
  0xa5   : > { %vm269_vm13 = vmand %vm268_vm12, %vm267_vm11  ;;  %s358_s12 = sshll.u32 %s249_s13, 4  ;;  %s1165_s12 = int_to_ptr.vmem [resolvable:$true] %s358_s12 }
  0xa6   : > { %v271_v23 = vsel %vm269_vm13, %v270_v21, %v266_v17  ;;  %s722_s10 = scalar_lea.vmem %s1165_s12, 128  ;;  %p729_p5 = scmp.lt.s32.totalorder %s1165_s12, %s727_s4 }
  0xa7   : > { %vm303_vm15 = vcmp.ge.s32.totalorder %v271_v23, %v302_v18  ;;  %vm306_vm0 = vcmp.lt.s32.totalorder %v271_v23, %v305_v19  ;;  %vm311_vm1 = vcmp.ge.s32.totalorder %v271_v23, %v310_v20  ;;  %vm314_vm2 = vcmp.lt.s32.totalorder %v271_v23, %v313_v22  ;;  %p723_p6 = scmp.ne.s32.totalorder %s1165_s12, %s722_s10  ;;  %p730_p9 = scmp.lt.s32.totalorder %s728_s19, %s722_s10 }
  0xa8   : > { %vm307_vm3 = vmand %vm303_vm15, %vm306_vm0  ;;  %vm1148_vm5 = vcmp.ge.s32.totalorder %v271_v23, %v318_v24  ;;  %vm322_vm6 = vcmp.lt.s32.totalorder %v271_v23, %v321_v25 }
  0xa9   : > { %vm308_vm4 = vmor %vm300_vm14, %vm307_vm3  ;;  %p724_p4 = pnand %p723_p6, %p1270_p7  ;;  %p731_p12 = por %p730_p9, %p729_p5 }
  0xaa   : > { %vm315_vm7 = vmand %vm311_vm1, %vm314_vm2 }
  0xab   : > { %vm316_vm8 = vmor %vm308_vm4, %vm315_vm7  ;;  %p725_p8 = pneg %p724_p4 }
  0xac   : > { %vm323_vm9 = vmand %vm1148_vm5, %vm322_vm6 }
  0xad   : > { %vm324_vm10 = vmor %vm316_vm8, %vm323_vm9  ;;  %p732_p0 = pnand %p731_p12, %p725_p8 }
  0xae   : > { %v333_v36 = vsel %vm324_vm10, 1, %v843_v35 }
  0xaf   : > { %vm334_vm11 = vcmp.eq.s32.totalorder %v333_v36, 1 }
  0xb0   : > { %v335_v37 = vsel %vm334_vm11, %v325_v27, %v329_v28  ;;  %v336_v38 = vsel %vm334_vm11, %v326_v29, %v330_v30  ;;  %v337_v39 = vsel %vm334_vm11, %v327_v31, %v331_v32  ;;  %v338_v40 = vsel %vm334_vm11, %v328_v33, %v332_v34 }
  0xb1   : > { %339 = vst [vmem:[%s249_s13] sm:$0x3] %v335_v37  ;;  %340 = vst [vmem:[%s249_s13 + $0x2] sm:$0x3] %v336_v38 }
  0xb2   : > { %341 = vst [vmem:[%s249_s13 + $0x4] sm:$0x3] %v337_v39  ;;  %342 = vst [vmem:[%s249_s13 + $0x6] sm:$0x3] %v338_v40 }
  0xb3   : > { %735 = shalt.err (!%p732_p0)
}
  0xb4   : > { %s736_s9 = scalar_lea.hbm %s1170_s25, 128  ;;  %s740_s16 = scalar_lea.hbm %s1230_s7, 256 }
  0xb5   : > { %p737_p2 = scmp.ne.s32.totalorder %s1170_s25, %s736_s9  ;;  %p741_p1 = scmp.lt.s32.totalorder %s1170_s25, %s1230_s7 }
  0xb6   : > { %p742_p13 = scmp.lt.s32.totalorder %s740_s16, %s736_s9 }
  0xb7   : > { %p738_p11 = pnand %p737_p2, %p1270_p7 }
  0xb8   : > { %p743_p3 = por %p742_p13, %p741_p1 }
  0xb9   : > { %p739_p10 = pneg %p738_p11 }
  0xbb   : > { %p744_p6 = pnand %p743_p3, %p739_p10 }
  0xbd   : > { %747 = shalt.err (!%p744_p6)
}
  0xbe   : > { %s845_s6 = smov 32   ;;  %s846_s13 = smov 2  }
  0xbf   : > { %511 = dma.vmem_to_hbm [thread:$0]  (%p1270_p7), %s1165_s12, 128, %s1170_s25, %s344_s11, %s845_s6, %s845_s6, %s846_s13  }
  0xc0 PF: > { %s373_s18 = sand.u32 1, %s812_s22   ;;  %p1271_p4 = scmp.ne.s32.totalorder %s1250_s14, 0 }
  0xc1   : > { %p1272_p8 = scmp.ge.s32.totalorder %s832_s27, 2  ;;  %s374_s28 = scalar_lea.sflag [#allocation10], %s373_s18 }
  0xc3   : > { %p523_p5 = pnand %p1272_p8, %p1271_p4 }
  0xc5   : > { %p524_p9 = pneg %p523_p5 }
  0xc7   : > { %795 = dma.done.wait (%p524_p9), %s374_s28, 128  }
  0xc8   : > { %797 = vsyncadd (%p524_p9), %s374_s28, 4294967168  ;;  %s46_s27 = sadd.s32 1, %s832_s27   ;;  %s1273_s2 = sld [smem:[#allocation20_spill]] }
  0xc9   : > { %p43_p12 = scmp.ge.s32.totalorder %s46_s27, 4   ;;  %s1274_s4 = smov %s804_s20 }
  0xca   : > { %s1275_s20 = smov %s808_s21  ;;  %s1276_s21 = smov %s1044_s29 }
  0xcb   : > { %s1277_s22 = smov %s816_s23  ;;  %s1278_s23 = smov %s820_s24 }
  0xcc   : > { %s1279_s24 = smov %s989_s1  ;;  %s1280_s25 = smov %s828_s26 }
  0xcd   :  { %45 = sbr.rel (!%p43_p12) target bundleno = 57 (0x39), region = 86 }
  0xce   : > { %s1281_s26 = smov %s1273_s2 }
  0xd2   :  { %379 = vsyncpa [#allocation9], 1 }
  0xd3   :  { %381 = vsyncpa [#allocation9 + $0x1], 1 }
  0xd4   :  { %382 = vsyncpa [#allocation12], 1 }
  0xd5   :  { %384 = vsyncpa [#allocation12 + $0x1], 1 }
  0xd6   :  { %385 = vsyncpa [#allocation10], 1 }
  0xd7   :  { %387 = vsyncpa [#allocation10 + $0x1], 1 }

</bundles_post_ra>
